<compile_context>
chip_gen: v5e
topology: v5e:2x2
jax: 0.10.0
libtpu: 0.0.40
codegen_flags: <defaults>
</compile_context>

<pallas_src>
import functools
import math

import jax
import jax.numpy as jnp
from jax import lax
from jax.experimental import pallas as pl
from jax.experimental.pallas import tpu as pltpu


def _gelu_new(x):
    c = math.sqrt(2.0 / math.pi)
    return 0.5 * x * (1.0 + jnp.tanh(c * (x + 0.044715 * x * x * x)))


def _gelu_erf(x):
    return x * 0.5 * (1.0 + lax.erf(x / math.sqrt(2.0)))


_ACTS = {
    "gelu_new": _gelu_new,
    "gelu": _gelu_erf,
    "relu": lambda x: jnp.maximum(x, 0.0),
    "swish": lambda x: x * jax.nn.sigmoid(x),
}


def _round_up(x, m):
    return (x + m - 1) // m * m


def _pick_tile(m_total, row_bytes, max_tile=512, budget=16 << 20):
    """Largest multiple-of-16 token tile whose double-buffered blocks fit budget."""
    t = budget // max(1, row_bytes)
    t = max(16, min(max_tile, (t // 16) * 16))
    return min(t, _round_up(m_total, 16))


# --------------------------------------------------------------------------
# Kernel bodies
# --------------------------------------------------------------------------

def _transform_kernel(x_ref, w1_ref, b1_ref, g_ref, beta_ref, h_ref, *,
                      eps, act, precision):
    """dense (H->E) + activation + LayerNorm(E), one token tile per grid step.

    x_ref : [tm, H]   w1_ref : [H, E]   b1/g/beta : [1, E]   h_ref : [tm, E]
    """
    x = x_ref[...].astype(w1_ref.dtype)
    h = jnp.dot(x, w1_ref[...], preferred_element_type=jnp.float32,
                precision=precision)
    h = h + b1_ref[...].astype(jnp.float32)
    h = act(h)
    mean = jnp.mean(h, axis=-1, keepdims=True)
    var = jnp.mean(jnp.square(h - mean), axis=-1, keepdims=True)
    h = (h - mean) * lax.rsqrt(var + eps)
    h = h * g_ref[...].astype(jnp.float32) + beta_ref[...].astype(jnp.float32)
    h_ref[...] = h.astype(h_ref.dtype)


def _decoder_kernel(h_ref, w2_ref, vb_ref, o_ref, *, precision):
    """decoder matmul (E->V tile) + vocab bias for one (token, vocab) tile.

    h_ref : [tm, E]   w2_ref : [E, tv]   vb_ref : [1, tv]   o_ref : [tm, tv]
    """
    logits = jnp.dot(h_ref[...], w2_ref[...],
                     preferred_element_type=jnp.float32, precision=precision)
    logits = logits + vb_ref[...].astype(jnp.float32)
    o_ref[...] = logits.astype(o_ref.dtype)


# --------------------------------------------------------------------------
# Parameter preprocessing (do ONCE at parameter load, not per forward call)
# --------------------------------------------------------------------------

def prepare_mlm_head_params(dense_w, dense_b, ln_gamma, ln_beta,
                            decoder_w, decoder_bias, compute_dtype=None):
    """Hoisted one-time prep: transpose weights to [in, out], 2-D biases.

    dense_w   : [E, H]  (torch nn.Linear(H, E).weight)
    decoder_w : [V, E]  (torch nn.Linear(E, V, bias=False).weight)
    compute_dtype: e.g. jnp.bfloat16 for production speed; defaults to the
                   parameter dtype (f32 params -> f32 with HIGHEST precision).
    """
    cdt = jnp.dtype(compute_dtype) if compute_dtype is not None else dense_w.dtype
    return {
        "w1t": dense_w.T.astype(cdt),            # [H, E]
        "b1": dense_b.reshape(1, -1),            # [1, E]
        "gamma": ln_gamma.reshape(1, -1),        # [1, E]
        "beta": ln_beta.reshape(1, -1),          # [1, E]
        "w2t": decoder_w.T.astype(cdt),          # [E, V]
        "vb": decoder_bias.reshape(1, -1),       # [1, V]
    }


# --------------------------------------------------------------------------
# Forward (hot path)
# --------------------------------------------------------------------------

def albert_only_mlm_head_apply(sequence_output, params, *, eps=1e-12,
                               hidden_act="gelu_new"):
    """AlbertOnlyMLMHead forward: sequence_output [B, S, H] -> scores [B, S, V]."""
    B, S, H = sequence_output.shape
    w1t, b1 = params["w1t"], params["b1"]
    gamma, beta = params["gamma"], params["beta"]
    w2t, vb = params["w2t"], params["vb"]
    E = w1t.shape[1]
    V = w2t.shape[1]
    assert w1t.shape[0] == H and w2t.shape[0] == E

    cdt = w1t.dtype
    cdt_size = jnp.dtype(cdt).itemsize
    out_dtype = sequence_output.dtype
    out_size = jnp.dtype(out_dtype).itemsize
    act = _ACTS[hidden_act]
    # f32 params -> HIGHEST precision (multi-pass MXU) to match the torch module;
    # bf16 params run natively on the MXU.
    precision = (lax.Precision.HIGHEST if cdt == jnp.float32
                 else lax.Precision.DEFAULT)

    M = B * S
    x = sequence_output.reshape(M, H)

    # ---------------- transform: x [M, H] -> h [M, E] ----------------
    tm_t = _pick_tile(M, 2 * (H * jnp.dtype(x.dtype).itemsize + E * cdt_size))
    transform = functools.partial(_transform_kernel, eps=float(eps), act=act,
                                  precision=precision)
    h = pl.pallas_call(
        transform,
        out_shape=jax.ShapeDtypeStruct((M, E), cdt),
        grid_spec=pltpu.PrefetchScalarGridSpec(
            num_scalar_prefetch=0,
            grid=(pl.cdiv(M, tm_t),),
            in_specs=[
                pl.BlockSpec((tm_t, H), lambda m: (m, 0)),   # x token tile
                pl.BlockSpec((H, E), lambda m: (0, 0)),      # dense weight (resident)
                pl.BlockSpec((1, E), lambda m: (0, 0)),      # dense bias
                pl.BlockSpec((1, E), lambda m: (0, 0)),      # LN gamma
                pl.BlockSpec((1, E), lambda m: (0, 0)),      # LN beta
            ],
            out_specs=pl.BlockSpec((tm_t, E), lambda m: (m, 0)),
        ),
        compiler_params=pltpu.CompilerParams(
            dimension_semantics=("parallel",)),
    )(x, w1t, b1, gamma, beta)

    # ---------------- decoder: h [M, E] x w2t [E, V] + bias -> [M, V] ----------------
    # Lane-dense vocab tile, capped so the double-buffered (E, tv) weight slab
    # stays small; vocab axis OUTERMOST so each weight tile is streamed once.
    tv = min(2048, _round_up(V, 128))
    max_tv_by_w2 = max(256, ((4 << 20) // max(1, 2 * E * cdt_size)) // 128 * 128)
    tv = max(128, min(tv, max_tv_by_w2))
    tm = _pick_tile(M, 2 * (E * cdt_size + tv * out_size))

    decoder = functools.partial(_decoder_kernel, precision=precision)
    out = pl.pallas_call(
        decoder,
        out_shape=jax.ShapeDtypeStruct((M, V), out_dtype),
        grid_spec=pltpu.PrefetchScalarGridSpec(
            num_scalar_prefetch=0,
            grid=(pl.cdiv(V, tv), pl.cdiv(M, tm)),           # (vocab, token)
            in_specs=[
                pl.BlockSpec((tm, E), lambda v, m: (m, 0)),   # h token tile
                pl.BlockSpec((E, tv), lambda v, m: (0, v)),   # decoder weight tile
                pl.BlockSpec((1, tv), lambda v, m: (0, v)),   # vocab bias tile
            ],
            out_specs=pl.BlockSpec((tm, tv), lambda v, m: (m, v)),
        ),
        compiler_params=pltpu.CompilerParams(
            # vocab axis parallel -> v7x's 2 TCs each stream half of [E, V].
            dimension_semantics=("parallel", "arbitrary")),
    )(h, w2t, vb)

    return out.reshape(B, S, V)


def albert_only_mlm_head(sequence_output, dense_w, dense_b, ln_gamma, ln_beta,
                         decoder_w, decoder_bias, *, eps=1e-12,
                         hidden_act="gelu_new", compute_dtype=None):
    """Convenience wrapper. For repeated calls, hoist prepare_mlm_head_params()."""
    params = prepare_mlm_head_params(dense_w, dense_b, ln_gamma, ln_beta,
                                     decoder_w, decoder_bias, compute_dtype)
    return albert_only_mlm_head_apply(sequence_output, params, eps=eps,
                                      hidden_act=hidden_act)


# --------------------------------------------------------------------------
# Reference + smoke test
# --------------------------------------------------------------------------

def _reference(sequence_output, dense_w, dense_b, ln_gamma, ln_beta,
               decoder_w, decoder_bias, eps=1e-12, hidden_act="gelu_new"):
    hp = lax.Precision.HIGHEST
    h = jnp.dot(sequence_output, dense_w.T, precision=hp) + dense_b
    h = _ACTS[hidden_act](h)
    mean = jnp.mean(h, axis=-1, keepdims=True)
    var = jnp.mean(jnp.square(h - mean), axis=-1, keepdims=True)
    h = (h - mean) / jnp.sqrt(var + eps)
    h = h * ln_gamma + ln_beta
    return jnp.dot(h, decoder_w.T, precision=hp) + decoder_bias


if __name__ == "__main__":
    # Small ALBERT-like config: hidden=32, embedding=16, vocab=256.
    B, S, H, E, V = 2, 8, 32, 16, 256
    key = jax.random.PRNGKey(0)
    ks = jax.random.split(key, 7)

    x = jax.random.normal(ks[0], (B, S, H), dtype=jnp.float32)

    bd1 = 1.0 / math.sqrt(H)
    dense_w = jax.random.uniform(ks[1], (E, H), minval=-bd1, maxval=bd1,
                                 dtype=jnp.float32)
    dense_b = jax.random.uniform(ks[2], (E,), minval=-bd1, maxval=bd1,
                                 dtype=jnp.float32)
    ln_gamma = 1.0 + 0.1 * jax.random.normal(ks[3], (E,), dtype=jnp.float32)
    ln_beta = 0.1 * jax.random.normal(ks[4], (E,), dtype=jnp.float32)

    bd2 = 1.0 / math.sqrt(E)
    decoder_w = jax.random.uniform(ks[5], (V, E), minval=-bd2, maxval=bd2,
                                   dtype=jnp.float32)
    decoder_bias = 0.02 * jax.random.normal(ks[6], (V,), dtype=jnp.float32)

    # One-time parameter prep (hoisted out of the forward path).
    params = prepare_mlm_head_params(dense_w, dense_b, ln_gamma, ln_beta,
                                     decoder_w, decoder_bias)
    fwd = jax.jit(functools.partial(albert_only_mlm_head_apply,
                                    eps=1e-12, hidden_act="gelu_new"))

    out = fwd(x, params)
    jax.block_until_ready(out)

    ref = _reference(x, dense_w, dense_b, ln_gamma, ln_beta,
                     decoder_w, decoder_bias)
    assert out.shape == (B, S, V)
    max_err = float(jnp.max(jnp.abs(out - ref)))
    assert jnp.allclose(out, ref, atol=2e-3, rtol=2e-3), max_err
    print("KERNEL_OK")
</pallas_src>

<mosaic_0001>
module attributes {stable_mosaic.version = 11 : i64} {
  func.func @_decoder_kernel(%arg0: i32, %arg1: i32, %arg2: memref<16x16xf32, #tpu.memory_space<vmem>>, %arg3: memref<16x256xf32, #tpu.memory_space<vmem>>, %arg4: memref<1x256xf32, #tpu.memory_space<vmem>>, %arg5: memref<16x256xf32, #tpu.memory_space<vmem>>) attributes {dimension_semantics = [#tpu.dimension_semantics<parallel>, #tpu.dimension_semantics<arbitrary>], iteration_bounds = array<i64: 1, 1>, scalar_prefetch = 0 : i64, scratch_operands = 0 : i64, tpu.core_type = #tpu.core_type<tc>, window_params = [{transform_indices = @transform_0, window_bounds = array<i64: 16, 16>}, {transform_indices = @transform_1, window_bounds = array<i64: 16, 256>}, {transform_indices = @transform_2, window_bounds = array<i64: 1, 256>}, {transform_indices = @transform_3, window_bounds = array<i64: 16, 256>}]} {
    %c0 = arith.constant 0 : index
    %c0_0 = arith.constant 0 : index
    %0 = vector.load %arg2[%c0, %c0_0] : memref<16x16xf32, #tpu.memory_space<vmem>>, vector<16x16xf32>
    %c0_1 = arith.constant 0 : index
    %c0_2 = arith.constant 0 : index
    %1 = vector.load %arg3[%c0_1, %c0_2] : memref<16x256xf32, #tpu.memory_space<vmem>>, vector<16x256xf32>
    %cst = arith.constant dense<0.000000e+00> : vector<16x256xf32>
    %2 = tpu.matmul %0, %1, %cst {dimension_numbers = #tpu.dot_dimension_numbers<[1], [0], [0], [1], [0, 0, 1, 1], [], []>, precision = #tpu.contract_precision<fp32>} : vector<16x16xf32>, vector<16x256xf32>, vector<16x256xf32> -> vector<16x256xf32>
    %c0_3 = arith.constant 0 : index
    %c0_4 = arith.constant 0 : index
    %3 = vector.load %arg4[%c0_3, %c0_4] : memref<1x256xf32, #tpu.memory_space<vmem>>, vector<1x256xf32>
    %4 = vector.broadcast %3 : vector<1x256xf32> to vector<16x256xf32>
    %5 = arith.addf %2, %4 : vector<16x256xf32>
    %c0_5 = arith.constant 0 : index
    %c0_6 = arith.constant 0 : index
    %6 = vector.load %arg5[%c0_5, %c0_6] : memref<16x256xf32, #tpu.memory_space<vmem>>, vector<16x256xf32>
    tpu.vector_store %arg5[%c0_5, %c0_6], %5 {strides = array<i32>} : memref<16x256xf32, #tpu.memory_space<vmem>>, vector<16x256xf32>,
    return
  }
  func.func @transform_0(%arg0: i32, %arg1: i32) -> (i32, i32) {
    %c0_i32 = arith.constant 0 : i32
    %c0_i32_0 = arith.constant 0 : i32
    return %arg1, %c0_i32 : i32, i32
  }
  func.func @transform_1(%arg0: i32, %arg1: i32) -> (i32, i32) {
    %c0_i32 = arith.constant 0 : i32
    %c0_i32_0 = arith.constant 0 : i32
    return %c0_i32, %arg0 : i32, i32
  }
  func.func @transform_2(%arg0: i32, %arg1: i32) -> (i32, i32) {
    %c0_i32 = arith.constant 0 : i32
    %c0_i32_0 = arith.constant 0 : i32
    return %c0_i32, %arg0 : i32, i32
  }
  func.func @transform_3(%arg0: i32, %arg1: i32) -> (i32, i32) {
    %c0_i32 = arith.constant 0 : i32
    return %arg1, %arg0 : i32, i32
  }
}

module attributes {stable_mosaic.version = 11 : i64} {
  func.func @_transform_kernel(%arg0: i32, %arg1: memref<16x32xf32, #tpu.memory_space<vmem>>, %arg2: memref<32x16xf32, #tpu.memory_space<vmem>>, %arg3: memref<1x16xf32, #tpu.memory_space<vmem>>, %arg4: memref<1x16xf32, #tpu.memory_space<vmem>>, %arg5: memref<1x16xf32, #tpu.memory_space<vmem>>, %arg6: memref<16x16xf32, #tpu.memory_space<vmem>>) attributes {dimension_semantics = [#tpu.dimension_semantics<parallel>], iteration_bounds = array<i64: 1>, scalar_prefetch = 0 : i64, scratch_operands = 0 : i64, tpu.core_type = #tpu.core_type<tc>, window_params = [{transform_indices = @transform_0, window_bounds = array<i64: 16, 32>}, {pipeline_mode = #tpu.pipeline_mode<synchronous>, transform_indices = @transform_1, window_bounds = array<i64: 32, 16>}, {pipeline_mode = #tpu.pipeline_mode<synchronous>, transform_indices = @transform_2, window_bounds = array<i64: 1, 16>}, {pipeline_mode = #tpu.pipeline_mode<synchronous>, transform_indices = @transform_3, window_bounds = array<i64: 1, 16>}, {pipeline_mode = #tpu.pipeline_mode<synchronous>, transform_indices = @transform_4, window_bounds = array<i64: 1, 16>}, {transform_indices = @transform_5, window_bounds = array<i64: 16, 16>}]} {
    %c0 = arith.constant 0 : index
    %c0_0 = arith.constant 0 : index
    %0 = vector.load %arg1[%c0, %c0_0] : memref<16x32xf32, #tpu.memory_space<vmem>>, vector<16x32xf32>
    %c0_1 = arith.constant 0 : index
    %c0_2 = arith.constant 0 : index
    %1 = vector.load %arg2[%c0_1, %c0_2] : memref<32x16xf32, #tpu.memory_space<vmem>>, vector<32x16xf32>
    %cst = arith.constant dense<0.000000e+00> : vector<16x16xf32>
    %2 = tpu.matmul %0, %1, %cst {dimension_numbers = #tpu.dot_dimension_numbers<[1], [0], [0], [1], [0, 0, 1, 1], [], []>, precision = #tpu.contract_precision<fp32>} : vector<16x32xf32>, vector<32x16xf32>, vector<16x16xf32> -> vector<16x16xf32>
    %c0_3 = arith.constant 0 : index
    %c0_4 = arith.constant 0 : index
    %3 = vector.load %arg3[%c0_3, %c0_4] : memref<1x16xf32, #tpu.memory_space<vmem>>, vector<1x16xf32>
    %4 = vector.broadcast %3 : vector<1x16xf32> to vector<16x16xf32>
    %5 = arith.addf %2, %4 : vector<16x16xf32>
    %cst_5 = arith.constant 5.000000e-01 : f32
    %6 = vector.broadcast %cst_5 : f32 to vector<16x16xf32>
    %7 = arith.mulf %6, %5 : vector<16x16xf32>
    %cst_6 = arith.constant 4.471500e-02 : f32
    %8 = vector.broadcast %cst_6 : f32 to vector<16x16xf32>
    %9 = arith.mulf %8, %5 : vector<16x16xf32>
    %10 = arith.mulf %9, %5 : vector<16x16xf32>
    %11 = arith.mulf %10, %5 : vector<16x16xf32>
    %12 = arith.addf %5, %11 : vector<16x16xf32>
    %cst_7 = arith.constant 0.797884583 : f32
    %13 = vector.broadcast %cst_7 : f32 to vector<16x16xf32>
    %14 = arith.mulf %13, %12 : vector<16x16xf32>
    %15 = math.tanh %14 : vector<16x16xf32>
    %cst_8 = arith.constant 1.000000e+00 : f32
    %16 = vector.broadcast %cst_8 : f32 to vector<16x16xf32>
    %17 = arith.addf %16, %15 : vector<16x16xf32>
    %18 = arith.mulf %7, %17 : vector<16x16xf32>
    %cst_9 = arith.constant dense<0.000000e+00> : vector<16xf32>
    %19 = vector.multi_reduction <add>, %18, %cst_9 [1] : vector<16x16xf32> to vector<16xf32>
    %20 = vector.shape_cast %19 : vector<16xf32> to vector<16x1xf32>
    %cst_10 = arith.constant 1.600000e+01 : f32
    %21 = vector.broadcast %cst_10 : f32 to vector<16x1xf32>
    %22 = arith.divf %20, %21 : vector<16x1xf32>
    %23 = vector.broadcast %22 : vector<16x1xf32> to vector<16x16xf32>
    %24 = arith.subf %18, %23 : vector<16x16xf32>
    %25 = arith.mulf %24, %24 : vector<16x16xf32>
    %cst_11 = arith.constant dense<0.000000e+00> : vector<16xf32>
    %26 = vector.multi_reduction <add>, %25, %cst_11 [1] : vector<16x16xf32> to vector<16xf32>
    %27 = vector.shape_cast %26 : vector<16xf32> to vector<16x1xf32>
    %cst_12 = arith.constant 1.600000e+01 : f32
    %28 = vector.broadcast %cst_12 : f32 to vector<16x1xf32>
    %29 = arith.divf %27, %28 : vector<16x1xf32>
    %30 = vector.broadcast %22 : vector<16x1xf32> to vector<16x16xf32>
    %31 = arith.subf %18, %30 : vector<16x16xf32>
    %cst_13 = arith.constant 9.99999996E-13 : f32
    %32 = vector.broadcast %cst_13 : f32 to vector<16x1xf32>
    %33 = arith.addf %29, %32 : vector<16x1xf32>
    %34 = math.rsqrt %33 : vector<16x1xf32>
    %35 = vector.broadcast %34 : vector<16x1xf32> to vector<16x16xf32>
    %36 = arith.mulf %31, %35 : vector<16x16xf32>
    %c0_14 = arith.constant 0 : index
    %c0_15 = arith.constant 0 : index
    %37 = vector.load %arg4[%c0_14, %c0_15] : memref<1x16xf32, #tpu.memory_space<vmem>>, vector<1x16xf32>
    %38 = vector.broadcast %37 : vector<1x16xf32> to vector<16x16xf32>
    %39 = arith.mulf %36, %38 : vector<16x16xf32>
    %c0_16 = arith.constant 0 : index
    %c0_17 = arith.constant 0 : index
    %40 = vector.load %arg5[%c0_16, %c0_17] : memref<1x16xf32, #tpu.memory_space<vmem>>, vector<1x16xf32>
    %41 = vector.broadcast %40 : vector<1x16xf32> to vector<16x16xf32>
    %42 = arith.addf %39, %41 : vector<16x16xf32>
    %c0_18 = arith.constant 0 : index
    %c0_19 = arith.constant 0 : index
    %43 = vector.load %arg6[%c0_18, %c0_19] : memref<16x16xf32, #tpu.memory_space<vmem>>, vector<16x16xf32>
    tpu.vector_store %arg6[%c0_18, %c0_19], %42 {strides = array<i32>} : memref<16x16xf32, #tpu.memory_space<vmem>>, vector<16x16xf32>,
    return
  }
  func.func @transform_0(%arg0: i32) -> (i32, i32) {
    %c0_i32 = arith.constant 0 : i32
    %c0_i32_0 = arith.constant 0 : i32
    return %arg0, %c0_i32 : i32, i32
  }
  func.func @transform_1(%arg0: i32) -> (i32, i32) {
    %c0_i32 = arith.constant 0 : i32
    %c0_i32_0 = arith.constant 0 : i32
    %c0_i32_1 = arith.constant 0 : i32
    return %c0_i32, %c0_i32_0 : i32, i32
  }
  func.func @transform_2(%arg0: i32) -> (i32, i32) {
    %c0_i32 = arith.constant 0 : i32
    %c0_i32_0 = arith.constant 0 : i32
    %c0_i32_1 = arith.constant 0 : i32
    return %c0_i32, %c0_i32_0 : i32, i32
  }
  func.func @transform_3(%arg0: i32) -> (i32, i32) {
    %c0_i32 = arith.constant 0 : i32
    %c0_i32_0 = arith.constant 0 : i32
    %c0_i32_1 = arith.constant 0 : i32
    return %c0_i32, %c0_i32_0 : i32, i32
  }
  func.func @transform_4(%arg0: i32) -> (i32, i32) {
    %c0_i32 = arith.constant 0 : i32
    %c0_i32_0 = arith.constant 0 : i32
    %c0_i32_1 = arith.constant 0 : i32
    return %c0_i32, %c0_i32_0 : i32, i32
  }
  func.func @transform_5(%arg0: i32) -> (i32, i32) {
    %c0_i32 = arith.constant 0 : i32
    %c0_i32_0 = arith.constant 0 : i32
    return %arg0, %c0_i32 : i32, i32
  }
}

</mosaic_0001>

<bundles_post_ra>
// kernel: albert_only_mlm_head_apply.3
= control target key start
LH: loop header
LB: loop body
LE: loop exit
PB: predicated region body
PF: predicated region fallthrough
CT: control target
= control target key end

     0   :  { %vm27_vm0 = vcmask 130048   ;;  %s530_s0 = inlined_call_operand.vmem [shape: f32[16,16], index: 0, kind: input, shape index: {}]   ;;  %s531_s1 = inlined_call_operand.vmem [shape: f32[16,256], index: 1, kind: input, shape index: {}]   ;;  %s532_s2 = inlined_call_operand.vmem [shape: f32[1,256], index: 2, kind: input, shape index: {}]   ;;  %s533_s3 = inlined_call_operand.hbm [shape: f32[16,256], index: 3, kind: output, shape index: {}]  }
   0x1   :  { %v19_v0 = vld [vmem:[%s531_s1 + $0x10] sm:$0xff]  ;;  %v17_v1 = vld [vmem:[%s531_s1] sm:$0xff]  ;;  %v20_v6 = vld [vmem:[%s531_s1 + $0x18] sm:$0xff] }
   0x2   :  { %v15_v2 = vld [vmem:[%s530_s0] sm:$0xff]  ;;  %v48_v3 = vand.u32 4294901760, %v19_v0  ;;  %v50_v4 = vand.u32 4294901760, %v17_v1  ;;  %v16_v7 = vld [vmem:[%s530_s0 + $0x8] sm:$0xff]  ;;  %v238_v10 = vand.u32 4294901760, %v20_v6 }
   0x3   :  { %v29_v5 = vsel %vm27_vm0, %v15_v2, 0  ;;  %v18_v8 = vld [vmem:[%s531_s1 + $0x8] sm:$0xff]  ;;  %v32_v11 = vsel %vm27_vm0, %v16_v7, 0 }
   0x4   :  { %v506_v9 = vand.u32 4294901760, %v29_v5  ;;  %v240_v12 = vand.u32 4294901760, %v18_v8 }
   0x5   :  { %8 = vsyncpa [#allocation3], 0  ;;  %v84_v13 = vsub.f32 %v19_v0, %v48_v3  ;;  %49 = vmatpush.msra.mxu0 %v48_v3  ;;  %v90_v14 = vsub.f32 %v17_v1, %v50_v4  ;;  %150 = vmatpush.msra.mxu3 %v48_v3  ;;  %v508_v15 = vand.u32 4294901760, %v32_v11  ;;  %v274_v17 = vsub.f32 %v20_v6, %v238_v10  ;;  %v21_v38 = vld [vmem:[%s532_s2] sm:$0x3]  ;;  %s465_s2 = smov [#allocation2]  }
   0x6   :  { %v53_v16 = vsub.f32 %v29_v5, %v506_v9  ;;  %v280_v18 = vsub.f32 %v18_v8, %v240_v12  ;;  %v23_v39 = vperm.slane %v21_v38, 0  ;;  %v24_v62 = vperm.slane %v21_v38, 1  ;;  %s422_s24 = sshll.u32 %s465_s2, 4  ;;  %s424_s27 = sshll.u32 %s533_s3, 4  ;;  %s423_s24 = int_to_ptr.vmem [resolvable:$true] %s422_s24  ;;  %s425_s27 = int_to_ptr.hbm [resolvable:$true] %s424_s27 }
   0x7   :  { %120 = vmatpush.msra.mxu2 %v84_v13  ;;  %51 = vmatpush.msra.mxu0 %v50_v4  ;;  %v85_v19 = vand.u32 4294901760, %v84_v13  ;;  %v91_v20 = vand.u32 4294901760, %v90_v14  ;;  %v61_v21 = vsub.f32 %v32_v11, %v508_v15  ;;  %v275_v23 = vand.u32 4294901760, %v274_v17  ;;  %s466_s28 = smov 256   ;;  %s467_s29 = smov 16  }
   0x8   :  { %152 = vmatpush.msra.mxu3 %v50_v4  ;;  %v54_v22 = vand.u32 4294901760, %v53_v16  ;;  %v281_v24 = vand.u32 4294901760, %v280_v18 }
   0x9   :  { %123 = vmatpush.msra.mxu2 %v90_v14  ;;  %v86_v25 = vsub.f32 %v84_v13, %v85_v19  ;;  %183 = vmatpush.msrb.mxu0 %v85_v19  ;;  %v92_v26 = vsub.f32 %v90_v14, %v91_v20  ;;  %v276_v28 = vsub.f32 %v274_v17, %v275_v23  ;;  %v62_v29 = vand.u32 4294901760, %v61_v21 }
   0xa   :  { %126 = vmatmul.f32.vlgmr.msra.gmra.mxu2 %v53_v16  ;;  %v55_v27 = vsub.f32 %v53_v16, %v54_v22  ;;  %156 = vmatmul.f32.vlgmr.msra.gmra.mxu3 %v54_v22  ;;  %v282_v30 = vsub.f32 %v280_v18, %v281_v24 }
   0xb   :  { %239 = vmatpush.msrb.mxu2 %v238_v10  ;;  %v87_v31 = vand.u32 4294901760, %v86_v25  ;;  %v93_v32 = vand.u32 4294901760, %v92_v26  ;;  %187 = vmatpush.msrb.mxu0 %v91_v20  ;;  %v277_v34 = vand.u32 4294901760, %v276_v28  ;;  %v63_v36 = vsub.f32 %v61_v21, %v62_v29 }
   0xc   :  { %v56_v33 = vand.u32 4294901760, %v55_v27  ;;  %v283_v35 = vand.u32 4294901760, %v282_v30 }
   0xd   :  { %88 = vmatpush.msra.mxu1 %v87_v31  ;;  %241 = vmatpush.msrb.mxu2 %v240_v12  ;;  %v64_v37 = vand.u32 4294901760, %v63_v36 }
   0xe   :  { %57 = vmatmul.f32.vlgmr.msra.gmra.mxu0 %v56_v33  ;;  %278 = vmatpush.msrb.mxu3 %v277_v34 }
   0xf   :  { %94 = vmatpush.msra.mxu1 %v93_v32  ;;  %373 = vmatpush.msra.mxu2 %v275_v23 }
  0x10   :  { %96 = vmatmul.f32.vlgmr.msra.gmra.mxu1 %v506_v9  ;;  %284 = vmatpush.msrb.mxu3 %v283_v35 }
  0x11   :  { %212 = vmatpush.msrb.mxu1 %v48_v3  ;;  %310 = vmatpush.msra.mxu0 %v274_v17 }
  0x12   :  { %131 = vmatmul.f32.gmra.mxu2 %v61_v21  ;;  %162 = vmatmul.f32.gmra.mxu3 %v62_v29 }
  0x13   :  { %214 = vmatpush.msrb.mxu1 %v50_v4  ;;  %402 = vmatpush.msra.mxu3 %v238_v10 }
  0x14   :  { %377 = vmatpush.msra.mxu2 %v281_v24  ;;  %313 = vmatpush.msra.mxu0 %v280_v18 }
  0x15   :  { %340 = vmatpush.msra.mxu1 %v238_v10  ;;  %404 = vmatpush.msra.mxu3 %v240_v12 }
  0x16   :  { %65 = vmatmul.f32.gmra.mxu0 %v64_v37 }
  0x17   :  { %342 = vmatpush.msra.mxu1 %v240_v12 }
  0x18   :  { %100 = vmatmul.f32.gmra.mxu1 %v508_v15 }
  0x1a   :  { %247 = vmatmul.f32.vlgmr.msrb.gmra.mxu2 %v56_v33  ;;  %286 = vmatmul.f32.vlgmr.msrb.gmra.mxu3 %v506_v9 }
  0x1e   :  { %189 = vmatmul.f32.vlgmr.msrb.gmra.mxu0 %v506_v9 }
  0x20   :  { %216 = vmatmul.f32.vlgmr.msrb.gmra.mxu1 %v506_v9 }
  0x22   :  { %255 = vmatmul.f32.gmra.mxu2 %v64_v37  ;;  %290 = vmatmul.f32.gmra.mxu3 %v508_v15 }
  0x26   :  { %193 = vmatmul.f32.gmra.mxu0 %v508_v15 }
  0x28   :  { %220 = vmatmul.f32.gmra.mxu1 %v508_v15 }
  0x2a   :  { %379 = vmatmul.f32.vlgmr.msra.gmra.mxu2 %v506_v9  ;;  %406 = vmatmul.f32.vlgmr.msra.gmra.mxu3 %v506_v9 }
  0x2e   :  { %316 = vmatmul.f32.vlgmr.msra.gmra.mxu0 %v53_v16 }
  0x30   :  { %346 = vmatmul.f32.vlgmr.msra.gmra.mxu1 %v54_v22 }
  0x32   :  { %383 = vmatmul.f32.gmra.mxu2 %v508_v15  ;;  %410 = vmatmul.f32.gmra.mxu3 %v508_v15 }
  0x36   :  { %321 = vmatmul.f32.gmra.mxu0 %v61_v21 }
  0x38   :  { %352 = vmatmul.f32.gmra.mxu1 %v62_v29 }
  0x8b   :  { %v58_v40 = vpop.f32.mrf.mxu0 }
  0x8c   :  { %v59_v43 = vadd.f32 %v58_v40, %v23_v39 }
  0x8d   :  { %v97_v41 = vpop.f32.mrf.mxu1  ;;  %v127_v42 = vpop.f32.mrf.mxu2 }
  0x8e   :  { %v157_v44 = vpop.f32.mrf.mxu3  ;;  %v98_v45 = vadd.f32 %v97_v41, %v59_v43 }
  0x90   :  { %v128_v49 = vadd.f32 %v127_v42, %v98_v45 }
  0x92   :  { %v158_v52 = vadd.f32 %v157_v44, %v128_v49 }
  0x93   :  { %v66_v46 = vpop.f32.mrf.mxu0 }
  0x94   :  { %v67_v50 = vadd.f32 %v66_v46, %v23_v39 }
  0x95   :  { %v101_v47 = vpop.f32.mrf.mxu1  ;;  %v132_v48 = vpop.f32.mrf.mxu2 }
  0x96   :  { %v163_v51 = vpop.f32.mrf.mxu3  ;;  %v102_v53 = vadd.f32 %v101_v47, %v67_v50 }
  0x98   :  { %v133_v58 = vadd.f32 %v132_v48, %v102_v53 }
  0x9a   :  { %v164_v61 = vadd.f32 %v163_v51, %v133_v58 }
  0x9b   :  { %v190_v54 = vpop.f32.mrf.mxu0 }
  0x9c   :  { %v191_v55 = vadd.f32 %v190_v54, %v158_v52 }
  0x9d   :  { %v217_v56 = vpop.f32.mrf.mxu1  ;;  %v248_v57 = vpop.f32.mrf.mxu2 }
  0x9e   :  { %v218_v59 = vadd.f32 %v217_v56, %v191_v55  ;;  %v287_v60 = vpop.f32.mrf.mxu3  ;;  %v249_v3 = vadd.f32 %v248_v57, %v24_v62 }
  0xa0   :  { %414 = vst [vmem:[#allocation2] sm:$0xff] %v218_v59  ;;  %v288_v6 = vadd.f32 %v287_v60, %v249_v3 }
  0xa3   :  { %v194_v63 = vpop.f32.mrf.mxu0 }
  0xa4   :  { %v195_v0 = vadd.f32 %v194_v63, %v164_v61 }
  0xa5   :  { %v221_v1 = vpop.f32.mrf.mxu1  ;;  %v256_v2 = vpop.f32.mrf.mxu2 }
  0xa6   :  { %v222_v4 = vadd.f32 %v221_v1, %v195_v0  ;;  %v291_v5 = vpop.f32.mrf.mxu3  ;;  %v257_v11 = vadd.f32 %v256_v2, %v24_v62 }
  0xa8   :  { %416 = vst [vmem:[#allocation2 + $0x10] sm:$0xff] %v222_v4  ;;  %v292_v15 = vadd.f32 %v291_v5, %v257_v11 }
  0xab   :  { %v317_v7 = vpop.f32.mrf.mxu0 }
  0xac   :  { %v318_v8 = vadd.f32 %v317_v7, %v288_v6 }
  0xad   :  { %v347_v9 = vpop.f32.mrf.mxu1  ;;  %v380_v10 = vpop.f32.mrf.mxu2 }
  0xae   :  { %v348_v12 = vadd.f32 %v347_v9, %v318_v8  ;;  %v407_v13 = vpop.f32.mrf.mxu3 }
  0xb0   :  { %v381_v14 = vadd.f32 %v380_v10, %v348_v12 }
  0xb2   :  { %v408_v16 = vadd.f32 %v407_v13, %v381_v14 }
  0xb3   :  { %v322_v17 = vpop.f32.mrf.mxu0 }
  0xb4   :  { %415 = vst [vmem:[#allocation2 + $0x8] sm:$0xff] %v408_v16  ;;  %v323_v18 = vadd.f32 %v322_v17, %v292_v15 }
  0xb5   :  { %v353_v19 = vpop.f32.mrf.mxu1  ;;  %v384_v20 = vpop.f32.mrf.mxu2 }
  0xb6   :  { %v354_v21 = vadd.f32 %v353_v19, %v323_v18  ;;  %v411_v22 = vpop.f32.mrf.mxu3 }
  0xb8   :  { %v385_v23 = vadd.f32 %v384_v20, %v354_v21 }
  0xba   :  { %v412_v24 = vadd.f32 %v411_v22, %v385_v23 }
  0xbc   :  { %417 = vst [vmem:[#allocation2 + $0x18] sm:$0xff] %v412_v24 }
  0xbd   :  { %430 = dma.vmem_to_hbm [thread:$0]  %s423_s24, 512, %s425_s27, [#allocation3], %s466_s28, %s466_s28, %s467_s29  }
  0xbe   :  { %463 = dma.done.wait [#allocation3], 512  }
  0xbf   :  { %464 = vsyncadd [#allocation3], 4294966784 }
  0xc0   :  { %435 = vsyncpa [#allocation3], 1 }

// kernel: albert_only_mlm_head_apply.2
= control target key start
LH: loop header
LB: loop body
LE: loop exit
PB: predicated region body
PF: predicated region fallthrough
CT: control target
= control target key end

     0   :  { %vm30_vm0 = vcmask 261120   ;;  %vm271_vm1 = vcmask 130048   ;;  %s467_s1 = inlined_call_operand.vmem [shape: f32[32,16], index: 1, kind: input, shape index: {}]   ;;  %s468_s0 = inlined_call_operand.vmem [shape: f32[16,32], index: 0, kind: input, shape index: {}]   ;;  %s469_s2 = inlined_call_operand.vmem [shape: f32[1,16], index: 2, kind: input, shape index: {}]   ;;  %s470_s3 = inlined_call_operand.vmem [shape: f32[1,16], index: 3, kind: input, shape index: {}]   ;;  %s471_s4 = inlined_call_operand.vmem [shape: f32[1,16], index: 4, kind: input, shape index: {}]   ;;  %s472_s5 = inlined_call_operand.vmem [shape: f32[16,16], index: 5, kind: output, shape index: {}]  }
   0x1   :  { %v25_v0 = vld [vmem:[%s467_s1 + $0x18] sm:$0xff]  ;;  %v24_v1 = vld [vmem:[%s467_s1 + $0x10] sm:$0xff]  ;;  %v23_v2 = vld [vmem:[%s467_s1 + $0x8] sm:$0xff] }
   0x2   :  { %v403_v3 = vand.u32 4294901760, %v25_v0  ;;  %v405_v4 = vand.u32 4294901760, %v24_v1  ;;  %v407_v5 = vand.u32 4294901760, %v23_v2  ;;  %v22_v6 = vld [vmem:[%s467_s1] sm:$0xff]  ;;  %v21_v7 = vld [vmem:[%s468_s0 + $0x8] sm:$0xff] }
   0x3   :  { %v20_v8 = vld [vmem:[%s468_s0] sm:$0xff]  ;;  %v418_v9 = vand.u32 4294901760, %v22_v6  ;;  %v35_v10 = vsel %vm30_vm0, %v21_v7, 0 }
   0x4   :  { %v32_v11 = vsel %vm30_vm0, %v20_v8, 0  ;;  %341 = vmatpush.msra.mxu2 %v403_v3  ;;  %v87_v12 = vsub.f32 %v25_v0, %v403_v3  ;;  %v422_v13 = vand.u32 4294901760, %v35_v10  ;;  %v93_v14 = vsub.f32 %v24_v1, %v405_v4  ;;  %50 = vmatpush.msra.mxu0 %v403_v3  ;;  %v350_v39 = vld [vmem:[%s469_s2] ss:$0 sm:$0xff] }
   0x5   :  { %v99_v15 = vsub.f32 %v23_v2, %v407_v5  ;;  %v105_v16 = vsub.f32 %v22_v6, %v418_v9  ;;  %v57_v17 = vand.u32 4294901760, %v32_v11 }
   0x6   :  { %342 = vmatpush.msra.mxu2 %v405_v4  ;;  %v88_v18 = vand.u32 4294901760, %v87_v12  ;;  %v66_v19 = vsub.f32 %v35_v10, %v422_v13  ;;  %v94_v20 = vand.u32 4294901760, %v93_v14  ;;  %52 = vmatpush.msra.mxu0 %v405_v4 }
   0x7   :  { %v100_v21 = vand.u32 4294901760, %v99_v15  ;;  %v106_v22 = vand.u32 4294901760, %v105_v16  ;;  %v58_v23 = vsub.f32 %v32_v11, %v57_v17 }
   0x8   :  { %343 = vmatpush.msra.mxu2 %v407_v5  ;;  %v89_v24 = vsub.f32 %v87_v12, %v88_v18  ;;  %v67_v25 = vand.u32 4294901760, %v66_v19  ;;  %v95_v26 = vsub.f32 %v93_v14, %v94_v20  ;;  %54 = vmatpush.msra.mxu0 %v407_v5 }
   0x9   :  { %v101_v27 = vsub.f32 %v99_v15, %v100_v21  ;;  %v59_v28 = vand.u32 4294901760, %v58_v23  ;;  %v107_v32 = vsub.f32 %v105_v16, %v106_v22 }
   0xa   :  { %344 = vmatpush.msra.mxu2 %v418_v9  ;;  %v90_v29 = vand.u32 4294901760, %v89_v24  ;;  %v68_v30 = vsub.f32 %v66_v19, %v67_v25  ;;  %v96_v31 = vand.u32 4294901760, %v95_v26  ;;  %56 = vmatpush.msra.mxu0 %v418_v9 }
   0xb   :  { %v60_v33 = vsub.f32 %v58_v23, %v59_v28  ;;  %v102_v35 = vand.u32 4294901760, %v101_v27  ;;  %v108_v37 = vand.u32 4294901760, %v107_v32 }
   0xc   :  { %133 = vmatpush.msrb.mxu2 %v87_v12  ;;  %202 = vmatpush.msrb.mxu0 %v88_v18  ;;  %v69_v34 = vand.u32 4294901760, %v68_v30 }
   0xd   :  { %345 = vmatpush.msra.mxu3 %v90_v29  ;;  %91 = vmatpush.msra.mxu1 %v90_v29  ;;  %v61_v36 = vand.u32 4294901760, %v60_v33 }
   0xe   :  { %136 = vmatpush.msrb.mxu2 %v93_v14  ;;  %206 = vmatpush.msrb.mxu0 %v94_v20 }
   0xf   :  { %70 = vmatmul.f32.vlgmr.msra.gmra.mxu2 %v69_v34  ;;  %346 = vmatpush.msra.mxu3 %v96_v31 }
  0x10   :  { %139 = vmatpush.msrb.mxu2 %v99_v15  ;;  %97 = vmatpush.msra.mxu1 %v96_v31 }
  0x11   :  { %347 = vmatpush.msra.mxu3 %v102_v35  ;;  %62 = vmatmul.f32.vlgmr.msra.gmra.mxu0 %v61_v36 }
  0x12   :  { %142 = vmatpush.msrb.mxu2 %v105_v16  ;;  %103 = vmatpush.msra.mxu1 %v102_v35 }
  0x13   :  { %348 = vmatpush.msra.mxu3 %v108_v37  ;;  %210 = vmatpush.msrb.mxu0 %v100_v21 }
  0x14   :  { %115 = vmatmul.f32.vlgmr.msra.gmra.mxu3 %v422_v13  ;;  %109 = vmatpush.msra.mxu1 %v108_v37 }
  0x15   :  { %167 = vmatpush.msrb.mxu3 %v403_v3  ;;  %111 = vmatmul.f32.vlgmr.msra.gmra.mxu1 %v57_v17 }
  0x16   :  { %237 = vmatpush.msrb.mxu1 %v403_v3  ;;  %214 = vmatpush.msrb.mxu0 %v106_v22 }
  0x17   :  { %145 = vmatmul.f32.vlgmr.msrb.gmra.mxu2 %v58_v23  ;;  %169 = vmatpush.msrb.mxu3 %v405_v4 }
  0x18   :  { %239 = vmatpush.msrb.mxu1 %v405_v4 }
  0x19   :  { %171 = vmatpush.msrb.mxu3 %v407_v5  ;;  %216 = vmatmul.f32.vlgmr.msrb.gmra.mxu0 %v57_v17 }
  0x1a   :  { %241 = vmatpush.msrb.mxu1 %v407_v5 }
  0x1b   :  { %173 = vmatpush.msrb.mxu3 %v418_v9 }
  0x1c   :  { %177 = vmatmul.f32.vlgmr.msrb.gmra.mxu3 %v59_v28  ;;  %243 = vmatpush.msrb.mxu1 %v418_v9 }
  0x1d   :  { %245 = vmatmul.f32.vlgmr.msrb.gmra.mxu1 %v57_v17 }
  0x1f   :  { %150 = vmatmul.f32.gmra.mxu2 %v66_v19  ;;  %v363_v19 = vmov 16.0  }
  0x21   :  { %220 = vmatmul.f32.gmra.mxu0 %v422_v13 }
  0x24   :  { %183 = vmatmul.f32.gmra.mxu3 %v67_v25 }
  0x25   :  { %249 = vmatmul.f32.gmra.mxu1 %v422_v13 }
  0x8e   :  { %v63_v38 = vpop.f32.mrf.mxu0 }
  0x8f   :  { %v64_v41 = vadd.f32 %v350_v39, %v63_v38 }
  0x92   :  { %v71_v40 = vpop.f32.mrf.mxu2  ;;  %v112_v42 = vpop.f32.mrf.mxu1 }
  0x93   :  { %v113_v44 = vadd.f32 %v112_v42, %v64_v41  ;;  %v72_v50 = vadd.f32 %v350_v39, %v71_v40 }
  0x96   :  { %v217_v47 = vpop.f32.mrf.mxu0 }
  0x97   :  { %v116_v43 = vpop.f32.mrf.mxu3 }
  0x98   :  { %v117_v54 = vadd.f32 %v116_v43, %v72_v50  ;;  %v351_v50 = vld [vmem:[%s470_s3] ss:$0 sm:$0xff] }
  0x9a   :  { %v146_v45 = vpop.f32.mrf.mxu2  ;;  %v246_v49 = vpop.f32.mrf.mxu1 }
  0x9b   :  { %v147_v46 = vadd.f32 %v146_v45, %v113_v44 }
  0x9e   :  { %v221_v59 = vpop.f32.mrf.mxu0 }
  0x9f   :  { %v178_v48 = vpop.f32.mrf.mxu3 }
  0xa0   :  { %v179_v51 = vadd.f32 %v178_v48, %v147_v46 }
  0xa2   :  { %v218_v52 = vadd.f32 %v217_v47, %v179_v51  ;;  %v151_v53 = vpop.f32.mrf.mxu2  ;;  %v250_v62 = vpop.f32.mrf.mxu1 }
  0xa3   :  { %v152_v56 = vadd.f32 %v151_v53, %v117_v54  ;;  %v352_v53 = vld [vmem:[%s471_s4] ss:$0 sm:$0xff] }
  0xa4   :  { %v247_v55 = vadd.f32 %v246_v49, %v218_v52 }
  0xa6   :  { %v255_v57 = vmul.f32 0.044715, %v247_v55  ;;  %v253_v10 = vmul.f32 0.5, %v247_v55 }
  0xa7   :  { %v184_v58 = vpop.f32.mrf.mxu3 }
  0xa8   :  { %v185_v60 = vadd.f32 %v184_v58, %v152_v56  ;;  %v257_v61 = vmul.f32 %v255_v57, %v247_v55 }
  0xaa   :  { %v222_v63 = vadd.f32 %v221_v59, %v185_v60  ;;  %v259_v0 = vmul.f32 %v257_v61, %v247_v55 }
  0xac   :  { %v251_v1 = vadd.f32 %v250_v62, %v222_v63  ;;  %v261_v2 = vadd.f32 %v259_v0, %v247_v55 }
  0xae   :  { %v256_v3 = vmul.f32 0.044715, %v251_v1  ;;  %v263_v4 = vmul.f32 0.7978846, %v261_v2  ;;  %v254_v15 = vmul.f32 0.5, %v251_v1 }
  0xb0   :  { %353 = vtanh.f32 %v263_v4  ;;  %v258_v5 = vmul.f32 %v256_v3, %v251_v1 }
  0xb2   :  { %v260_v6 = vmul.f32 %v258_v5, %v251_v1 }
  0xb4   :  { %v262_v7 = vadd.f32 %v260_v6, %v251_v1 }
  0xb6   :  { %v354_v8 = vpop.eup %353  ;;  %v264_v9 = vmul.f32 0.7978846, %v262_v7 }
  0xb7   :  { %v267_v11 = vadd.f32 1.0, %v354_v8 }
  0xb8   :  { %355 = vtanh.f32 %v264_v9 }
  0xb9   :  { %v269_v12 = vmul.f32 %v267_v11, %v253_v10  ;;  %357 = vrcp.f32 %v363_v19 }
  0xbb   :  { %v272_v13 = vsel %vm271_vm1, %v269_v12, 0.0 }
  0xbc   :  { %273 = vadd.xlane.f32.xlu0 %v272_v13 }
  0xbe   :  { %v356_v14 = vpop.eup %355 }
  0xbf   :  { %v268_v16 = vadd.f32 1.0, %v356_v14  ;;  %v358_v20 = vpop.eup %357 }
  0xc0   :  { %v279_v21 = vmul.f32 16.0, %v358_v20  ;;  %vm283_vm2 = vweird.f32 %v358_v20 }
  0xc1   :  { %v270_v17 = vmul.f32 %v268_v16, %v254_v15 }
  0xc2   :  { %v280_v22 = vsub.f32 1.0, %v279_v21 }
  0xc3   :  { %v275_v18 = vsel %vm271_vm1, %v270_v17, 0.0 }
  0xc4   :  { %276 = vadd.xlane.f32.xlu0 %v275_v18  ;;  %v281_v23 = vmul.f32 %v358_v20, %v280_v22 }
  0xc6   :  { %v282_v24 = vadd.f32 %v358_v20, %v281_v23 }
  0xc8   :  { %v284_v25 = vsel %vm283_vm2, %v358_v20, %v282_v24 }
 0x12f   :  { %v274_v26 = vpop.xlane.xlu0 %273 }
 0x130   :  { %v285_v27 = vmul.f32 %v284_v25, %v274_v26 }
 0x132   :  { %v287_v28 = vsub.f32 %v269_v12, %v285_v27 }
 0x134   :  { %v289_v29 = vmul.f32 %v287_v28, %v287_v28 }
 0x136   :  { %v291_v30 = vsel %vm271_vm1, %v289_v29, 0.0 }
 0x137   :  { %292 = vadd.xlane.f32.xlu1 %v291_v30  ;;  %v277_v31 = vpop.xlane.xlu0 %276 }
 0x138   :  { %v286_v32 = vmul.f32 %v284_v25, %v277_v31 }
 0x13a   :  { %v288_v33 = vsub.f32 %v270_v17, %v286_v32 }
 0x13c   :  { %v290_v34 = vmul.f32 %v288_v33, %v288_v33 }
 0x13e   :  { %v294_v35 = vsel %vm271_vm1, %v290_v34, 0.0 }
 0x13f   :  { %295 = vadd.xlane.f32.xlu1 %v294_v35 }
 0x1aa   :  { %v293_v36 = vpop.xlane.xlu1 %292 }
 0x1ab   :  { %v297_v37 = vmul.f32 %v293_v36, %v284_v25 }
 0x1ad   :  { %v299_v38 = vadd.f32 1e-12, %v297_v37 }
 0x1af   :  { %359 = vrsqrt.f32 %v299_v38  ;;  %vm307_vm4 = vweird.f32 %v299_v38 }
 0x1b2   :  { %v296_v39 = vpop.xlane.xlu1 %295 }
 0x1b3   :  { %v298_v40 = vmul.f32 %v296_v39, %v284_v25 }
 0x1b5   :  { %v360_v41 = vpop.eup %359  ;;  %v300_v42 = vadd.f32 1e-12, %v298_v40 }
 0x1b6   :  { %v302_v43 = vmul.f32 %v360_v41, %v299_v38  ;;  %vm308_vm3 = vweird.f32 %v360_v41 }
 0x1b7   :  { %361 = vrsqrt.f32 %v300_v42  ;;  %vm309_vm5 = vmor %vm307_vm4, %vm308_vm3  ;;  %vm317_vm7 = vweird.f32 %v300_v42 }
 0x1b8   :  { %v303_v44 = vmul.f32 %v360_v41, %v302_v43 }
 0x1ba   :  { %v304_v45 = vmul.f32 0.5, %v303_v44 }
 0x1bc   :  { %v305_v46 = vsub.f32 1.5, %v304_v45 }
 0x1bd   :  { %v362_v47 = vpop.eup %361 }
 0x1be   :  { %v306_v48 = vmul.f32 %v360_v41, %v305_v46  ;;  %v312_v49 = vmul.f32 %v362_v47, %v300_v42  ;;  %vm318_vm6 = vweird.f32 %v362_v47 }
 0x1bf   :  { %vm319_vm8 = vmor %vm317_vm7, %vm318_vm6 }
 0x1c0   :  { %v310_v51 = vsel %vm309_vm5, %v360_v41, %v306_v48  ;;  %v313_v52 = vmul.f32 %v362_v47, %v312_v49 }
 0x1c1   :  { %v321_v54 = vmul.f32 %v310_v51, %v287_v28 }
 0x1c2   :  { %v314_v55 = vmul.f32 0.5, %v313_v52 }
 0x1c3   :  { %v327_v56 = vmul.f32 %v351_v50, %v321_v54 }
 0x1c4   :  { %v315_v57 = vsub.f32 1.5, %v314_v55 }
 0x1c5   :  { %v333_v58 = vadd.f32 %v352_v53, %v327_v56 }
 0x1c6   :  { %v316_v59 = vmul.f32 %v362_v47, %v315_v57 }
 0x1c7   :  { %335 = vst.msk [vmem:[%s472_s5] sm:$0xff] %vm271_vm1, %v333_v58 }
 0x1c8   :  { %v320_v60 = vsel %vm319_vm8, %v362_v47, %v316_v59 }
 0x1c9   :  { %v322_v61 = vmul.f32 %v320_v60, %v288_v33 }
 0x1cb   :  { %v328_v62 = vmul.f32 %v351_v50, %v322_v61 }
 0x1cd   :  { %v334_v63 = vadd.f32 %v352_v53, %v328_v62 }
 0x1cf   :  { %336 = vst.msk [vmem:[%s472_s5 + $0x8] sm:$0xff] %vm271_vm1, %v334_v63 }

</bundles_post_ra>
